<compile_context>
chip_gen: v6e
topology: v6e:2x2x1
jax: 0.10.0
libtpu: 0.0.40
codegen_flags: <defaults>
</compile_context>

<pallas_src>
import functools

import jax
import jax.numpy as jnp
import numpy as np
from jax.experimental import pallas as pl
from jax.experimental.pallas import tpu as pltpu


def _round_up(x: int, m: int) -> int:
    return (x + m - 1) // m * m


def _pick_tile_n(n: int, f_pad: int) -> int:
    """Largest row tile whose double-buffered bf16 multi-hot slab stays under ~8 MiB."""
    budget = 8 * 1024 * 1024
    t = budget // max(1, 2 * f_pad * 2)          # 2 buffers x bf16 bytes
    t = int(max(16, min(512, t)))
    t = (t // 16) * 16                            # bf16 sublane packing granularity
    t = min(t, _round_up(max(n, 1), 16))          # don't over-tile tiny batches
    return max(t, 16)


def _ensfm_kernel(mh_ref, rhs_ref, h1_ref, bias_ref, out_ref, *, d, scalar_first):
    """One row-tile of the stacked p_u (or q_v) matrix.

    mh_ref  : (TN, F_pad)   bf16 multi-hot selector tile ({0,1,..} exact)
    rhs_ref : (F_pad, Rpad) f32 fused RHS = [emb | emb*emb | w | 0-pad]   (VMEM-resident)
    h1_ref  : (1, D)        f32 h1                                        (VMEM-resident)
    bias_ref: (1,)          f32 global bias (0 for item side), SMEM
    out_ref : (TN, OUT_pad) f32 padded output tile
    """
    mh = mh_ref[...].astype(jnp.float32)                                   # exact cast

    # Single fused MXU pass: [sum_E | sum_E^2 | sum_w] for every row of the tile.
    fused = jnp.dot(mh, rhs_ref[...], preferred_element_type=jnp.float32)  # (TN, Rpad)
    sum_e = fused[:, :d]                                                   # (TN, D)
    sum_e2 = fused[:, d:2 * d]                                             # (TN, D)
    lin = fused[:, 2 * d:2 * d + 1]                                        # (TN, 1)

    # Efficient bi-interaction f_BI (Eq. 14), then h1 dot on VPU + XLU reduce.
    bi = 0.5 * (sum_e * sum_e - sum_e2)
    scalar = jnp.sum(bi * h1_ref[...], axis=-1, keepdims=True) + lin + bias_ref[0]
    ones = jnp.ones_like(scalar)
    tail = jnp.concatenate([scalar, ones] if scalar_first else [ones, scalar], axis=-1)

    out_ref[:, :d] = sum_e
    out_ref[:, d:d + 2] = tail
    out_pad = out_ref.shape[-1]
    if out_pad > d + 2:  # zero the lane padding (sliced off by the wrapper)
        out_ref[:, d + 2:] = jnp.zeros((mh.shape[0], out_pad - (d + 2)), jnp.float32)


def _build_multihot(index_lists, n_pad, f_pad):
    """Dense multi-hot selector (padded). Duplicate indexes count multiply, matching
    torch's embeddings[idxs] gather-then-sum semantics."""
    mh = np.zeros((n_pad, f_pad), np.float32)
    lens = [len(ix) for ix in index_lists]
    if index_lists and sum(lens) > 0:
        rows = np.repeat(np.arange(len(index_lists)), lens)
        cols = np.concatenate([np.asarray(ix, np.int64) for ix in index_lists if len(ix)])
        np.add.at(mh, (rows, cols), 1.0)
    return mh


def _fused_rhs(emb, w, f_pad, rhs_pad):
    """Precompute RHS = [emb | emb*emb | w] once (hoisted out of the kernel grid loop)."""
    f, d = emb.shape
    emb = emb.astype(jnp.float32)
    rhs = jnp.zeros((f_pad, rhs_pad), jnp.float32)
    rhs = rhs.at[:f, :d].set(emb)
    rhs = rhs.at[:f, d:2 * d].set(emb * emb)
    rhs = rhs.at[:f, 2 * d].set(w.astype(jnp.float32))
    return rhs


def _ensfm_side(index_lists, embeddings, first_order_w, h1, bias, *, scalar_first):
    n = len(index_lists)
    f, d = embeddings.shape
    f_pad = _round_up(max(f, 1), 128)
    rhs_pad = _round_up(2 * d + 1, 128)
    out_pad = _round_up(d + 2, 128)
    tile_n = _pick_tile_n(n, f_pad)
    n_pad = _round_up(max(n, 1), tile_n)

    # glue: ragged indexes -> padded multi-hot, shipped as bf16 (lossless for counts)
    mh = jnp.asarray(_build_multihot(index_lists, n_pad, f_pad), dtype=jnp.bfloat16)
    rhs = _fused_rhs(embeddings, first_order_w, f_pad, rhs_pad)
    h1_2d = h1.reshape(1, d).astype(jnp.float32)
    bias_1d = jnp.asarray(bias, jnp.float32).reshape(1)

    # VMEM budget: double-buffered mh tile + resident RHS + double-buffered out tile.
    needed = (2 * tile_n * f_pad * 2 + 2 * f_pad * rhs_pad * 4
              + 2 * tile_n * out_pad * 4 + d * 4 + (1 << 20))
    vmem_limit = int(min(64 * 1024 * 1024, max(2 * needed, 16 * 1024 * 1024)))

    kernel = functools.partial(_ensfm_kernel, d=d, scalar_first=scalar_first)
    out = pl.pallas_call(
        kernel,
        out_shape=jax.ShapeDtypeStruct((n_pad, out_pad), jnp.float32),
        grid=(n_pad // tile_n,),
        in_specs=[
            pl.BlockSpec((tile_n, f_pad), lambda i: (i, 0)),      # multi-hot row tile
            pl.BlockSpec((f_pad, rhs_pad), lambda i: (0, 0)),     # fused RHS (resident)
            pl.BlockSpec((1, d), lambda i: (0, 0)),               # h1 (resident)
            pl.BlockSpec(memory_space=pltpu.MemorySpace.SMEM),    # global bias scalar
        ],
        out_specs=pl.BlockSpec((tile_n, out_pad), lambda i: (i, 0)),
        compiler_params=pltpu.CompilerParams(
            dimension_semantics=("parallel",),        # shards row tiles across v7x's 2 TCs
            vmem_limit_bytes=vmem_limit,
        ),
    )(mh, rhs, h1_2d, bias_1d)
    # TODO(synk): for very large / very sparse feature spaces, switch the dense multi-hot
    # matmul to a PrefetchScalarGridSpec index-gather formulation (and add an F-reduction
    # grid axis with VMEM accumulators).
    return out[:n, :d + 2]


class ENSFMPallas:
    """JAX/Pallas port of EfficientNonSamplingFactorizationMachines.forward."""

    def __init__(self, user_features_number, item_features_number,
                 dimension_of_embeddings, negative_weight=0.5, *, key):
        k1, k2, k3, k4, k5 = jax.random.split(key, 5)
        # torch.rand -> uniform [0, 1)
        self.user_w = jax.random.uniform(k1, (user_features_number,), jnp.float32)
        self.item_w = jax.random.uniform(k2, (item_features_number,), jnp.float32)
        self.global_bias = jax.random.uniform(k3, (1,), jnp.float32)
        self.h1 = jax.random.uniform(k4, (dimension_of_embeddings,), jnp.float32)
        self.h2 = jax.random.uniform(k5, (dimension_of_embeddings,), jnp.float32)
        self.negative_weight = negative_weight

    def forward(self, user_features_embeddings, item_features_embeddings,
                batch_users_nonzero_indexes_of_features,
                all_items_nonzero_indexes_of_features):
        user_idx_lists = [list(ix) for _, ix in batch_users_nonzero_indexes_of_features]
        item_idx_lists = [list(ix) for _, ix in all_items_nonzero_indexes_of_features]

        p_matrix = _ensfm_side(user_idx_lists, user_features_embeddings,
                               self.user_w, self.h1, self.global_bias,
                               scalar_first=True)
        q_matrix = _ensfm_side(item_idx_lists, item_features_embeddings,
                               self.item_w, self.h1, jnp.zeros((1,), jnp.float32),
                               scalar_first=False)
        return p_matrix, q_matrix, self.h2


# ------------------- plain-JAX reference (per-row, matches PyTorch) -------------------
def _ref_build_p(emb, idxs, w, h1, bias):
    sel = emb[np.asarray(idxs)]
    p_ud = jnp.sum(sel, axis=0)
    bi = 0.5 * (jnp.square(jnp.sum(sel, axis=0)) - jnp.sum(jnp.square(sel), axis=0))
    scalar = jnp.dot(h1, bi) + jnp.sum(w[np.asarray(idxs)]) + bias
    return jnp.concatenate([p_ud, scalar.reshape(-1), jnp.ones(1)])


def _ref_build_q(emb, idxs, w, h1):
    sel = emb[np.asarray(idxs)]
    q_vd = jnp.sum(sel, axis=0)
    bi = 0.5 * (jnp.square(jnp.sum(sel, axis=0)) - jnp.sum(jnp.square(sel), axis=0))
    scalar = jnp.dot(h1, bi) + jnp.sum(w[np.asarray(idxs)])
    return jnp.concatenate([q_vd, jnp.ones(1), scalar.reshape(1)])


if __name__ == "__main__":
    USER_F, ITEM_F, D = 16, 24, 32

    key = jax.random.PRNGKey(0)
    k_model, k_ue, k_ie = jax.random.split(key, 3)
    model = ENSFMPallas(USER_F, ITEM_F, D, negative_weight=0.5, key=k_model)

    user_emb = jax.random.normal(k_ue, (USER_F, D), jnp.float32)
    item_emb = jax.random.normal(k_ie, (ITEM_F, D), jnp.float32)

    # ragged nonzero one-hot indexes per user / per item (deterministic)
    batch_users = [(0, [0, 3, 7]), (1, [1, 2]), (2, [5, 8, 9, 11]), (3, [15])]
    all_items = [(0, [0, 1]), (1, [2, 5, 7]), (2, [10]), (3, [3, 4, 6, 8]),
                 (4, [12, 13]), (5, [20, 23])]

    p_mat, q_mat, h2 = model.forward(user_emb, item_emb, batch_users, all_items)
    jax.block_until_ready((p_mat, q_mat, h2))

    # correctness check against the per-row PyTorch-style reference
    p_ref = jnp.stack([_ref_build_p(user_emb, idxs, model.user_w, model.h1,
                                    model.global_bias[0]) for _, idxs in batch_users])
    q_ref = jnp.stack([_ref_build_q(item_emb, idxs, model.item_w, model.h1)
                       for _, idxs in all_items])
    assert p_mat.shape == (len(batch_users), D + 2)
    assert q_mat.shape == (len(all_items), D + 2)
    np.testing.assert_allclose(np.asarray(p_mat), np.asarray(p_ref), rtol=1e-5, atol=1e-5)
    np.testing.assert_allclose(np.asarray(q_mat), np.asarray(q_ref), rtol=1e-5, atol=1e-5)

    # TODO(synk): the multiprocessing-based loss helpers are training-time utilities,
    # not part of forward(), and are intentionally not ported.
    print("KERNEL_OK")
</pallas_src>

<mosaic_0001>
module attributes {stable_mosaic.version = 11 : i64} {
  func.func @_ensfm_kernel(%arg0: i32, %arg1: memref<16x128xbf16, #tpu.memory_space<vmem>>, %arg2: memref<128x128xf32, #tpu.memory_space<vmem>>, %arg3: memref<1x32xf32, #tpu.memory_space<vmem>>, %arg4: memref<1xf32, #tpu.memory_space<smem>>, %arg5: memref<16x128xf32, #tpu.memory_space<vmem>>) attributes {dimension_semantics = [#tpu.dimension_semantics<parallel>], iteration_bounds = array<i64: 1>, scalar_prefetch = 0 : i64, scratch_operands = 0 : i64, tpu.core_type = #tpu.core_type<tc>, window_params = [{transform_indices = @transform_0, window_bounds = array<i64: 16, 128>}, {pipeline_mode = #tpu.pipeline_mode<synchronous>, transform_indices = @transform_1, window_bounds = array<i64: 128, 128>}, {pipeline_mode = #tpu.pipeline_mode<synchronous>, transform_indices = @transform_2, window_bounds = array<i64: 1, 32>}, {transform_indices = @transform_3, window_bounds = array<i64: 1>}, {transform_indices = @transform_4, window_bounds = array<i64: 16, 128>}]} {
    %c0 = arith.constant 0 : index
    %c0_0 = arith.constant 0 : index
    %0 = vector.load %arg1[%c0, %c0_0] : memref<16x128xbf16, #tpu.memory_space<vmem>>, vector<16x128xbf16>
    %1 = arith.extf %0 : vector<16x128xbf16> to vector<16x128xf32>
    %c0_1 = arith.constant 0 : index
    %c0_2 = arith.constant 0 : index
    %2 = vector.load %arg2[%c0_1, %c0_2] : memref<128x128xf32, #tpu.memory_space<vmem>>, vector<128x128xf32>
    %cst = arith.constant dense<0.000000e+00> : vector<16x128xf32>
    %3 = tpu.matmul %1, %2, %cst {dimension_numbers = #tpu.dot_dimension_numbers<[1], [0], [0], [1], [0, 0, 1, 1], [], []>} : vector<16x128xf32>, vector<128x128xf32>, vector<16x128xf32> -> vector<16x128xf32>
    %4 = vector.extract_strided_slice %3 {offsets = [0, 0], sizes = [16, 32], strides = [1, 1]} : vector<16x128xf32> to vector<16x32xf32>
    %5 = vector.extract_strided_slice %3 {offsets = [0, 32], sizes = [16, 32], strides = [1, 1]} : vector<16x128xf32> to vector<16x32xf32>
    %6 = vector.extract_strided_slice %3 {offsets = [0, 64], sizes = [16, 1], strides = [1, 1]} : vector<16x128xf32> to vector<16x1xf32>
    %7 = arith.mulf %4, %4 : vector<16x32xf32>
    %8 = arith.subf %7, %5 : vector<16x32xf32>
    %cst_3 = arith.constant 5.000000e-01 : f32
    %9 = vector.broadcast %cst_3 : f32 to vector<16x32xf32>
    %10 = arith.mulf %9, %8 : vector<16x32xf32>
    %c0_4 = arith.constant 0 : index
    %c0_5 = arith.constant 0 : index
    %11 = vector.load %arg3[%c0_4, %c0_5] : memref<1x32xf32, #tpu.memory_space<vmem>>, vector<1x32xf32>
    %12 = vector.broadcast %11 : vector<1x32xf32> to vector<16x32xf32>
    %13 = arith.mulf %10, %12 : vector<16x32xf32>
    %cst_6 = arith.constant dense<0.000000e+00> : vector<16xf32>
    %14 = vector.multi_reduction <add>, %13, %cst_6 [1] : vector<16x32xf32> to vector<16xf32>
    %15 = vector.shape_cast %14 : vector<16xf32> to vector<16x1xf32>
    %16 = arith.addf %15, %6 : vector<16x1xf32>
    %c0_7 = arith.constant 0 : index
    %17 = memref.load %arg4[%c0_7] : memref<1xf32, #tpu.memory_space<smem>>
    %18 = vector.broadcast %17 : f32 to vector<16x1xf32>
    %19 = arith.addf %16, %18 : vector<16x1xf32>
    %cst_8 = arith.constant 1.000000e+00 : f32
    %20 = vector.broadcast %cst_8 : f32 to vector<16x1xf32>
    %21 = tpu.concatenate %19, %20 in 1 : vector<16x1xf32>, vector<16x1xf32> -> vector<16x2xf32>
    %c0_9 = arith.constant 0 : index
    %c0_10 = arith.constant 0 : index
    %22 = vector.load %arg5[%c0_9, %c0_10] : memref<16x128xf32, #tpu.memory_space<vmem>>, vector<16x32xf32>
    tpu.vector_store %arg5[%c0_9, %c0_10], %4 {strides = array<i32>} : memref<16x128xf32, #tpu.memory_space<vmem>>, vector<16x32xf32>,
    %c0_11 = arith.constant 0 : index
    %c32 = arith.constant 32 : index
    %23 = vector.load %arg5[%c0_11, %c32] : memref<16x128xf32, #tpu.memory_space<vmem>>, vector<16x2xf32>
    tpu.vector_store %arg5[%c0_11, %c32], %21 {strides = array<i32>} : memref<16x128xf32, #tpu.memory_space<vmem>>, vector<16x2xf32>,
    %cst_12 = arith.constant 0.000000e+00 : f32
    %24 = vector.broadcast %cst_12 : f32 to vector<16x94xf32>
    %c0_13 = arith.constant 0 : index
    %c34 = arith.constant 34 : index
    %25 = vector.load %arg5[%c0_13, %c34] : memref<16x128xf32, #tpu.memory_space<vmem>>, vector<16x94xf32>
    tpu.vector_store %arg5[%c0_13, %c34], %24 {strides = array<i32>} : memref<16x128xf32, #tpu.memory_space<vmem>>, vector<16x94xf32>,
    return
  }
  func.func @transform_0(%arg0: i32) -> (i32, i32) {
    %c0_i32 = arith.constant 0 : i32
    %c0_i32_0 = arith.constant 0 : i32
    return %arg0, %c0_i32 : i32, i32
  }
  func.func @transform_1(%arg0: i32) -> (i32, i32) {
    %c0_i32 = arith.constant 0 : i32
    %c0_i32_0 = arith.constant 0 : i32
    %c0_i32_1 = arith.constant 0 : i32
    return %c0_i32, %c0_i32_0 : i32, i32
  }
  func.func @transform_2(%arg0: i32) -> (i32, i32) {
    %c0_i32 = arith.constant 0 : i32
    %c0_i32_0 = arith.constant 0 : i32
    %c0_i32_1 = arith.constant 0 : i32
    return %c0_i32, %c0_i32_0 : i32, i32
  }
  func.func @transform_3(%arg0: i32) -> i32 {
    %c0_i32 = arith.constant 0 : i32
    %c0_i32_0 = arith.constant 0 : i32
    return %c0_i32 : i32
  }
  func.func @transform_4(%arg0: i32) -> (i32, i32) {
    %c0_i32 = arith.constant 0 : i32
    %c0_i32_0 = arith.constant 0 : i32
    return %arg0, %c0_i32 : i32, i32
  }
}

</mosaic_0001>

<bundles_post_ra>
// kernel: tpu_custom_call.1
= control target key start
LH: loop header
LB: loop body
LE: loop exit
PB: predicated region body
PF: predicated region fallthrough
CT: control target
= control target key end

     0   :  { %10 = vsyncpa [#allocation4], 0  ;;  %s421_s0 = inlined_call_operand.hbm [shape: bf16[16,128], index: 0, kind: input, shape index: {}]   ;;  %s422_s1 = inlined_call_operand.hbm [shape: f32[128,128], index: 1, kind: input, shape index: {}]   ;;  %s423_s2 = inlined_call_operand.vmem [shape: f32[1,32], index: 2, kind: input, shape index: {}]   ;;  %s424_s3 = inlined_call_operand.<no memory space> [shape: f32[1], index: 3, kind: input, shape index: {}]   ;;  %s425_s4 = inlined_call_operand.hbm [shape: f32[16,128], index: 4, kind: output, shape index: {}]  }
   0x1   :  { %11 = vsyncpa [#allocation7], 0 }
   0x2   :  { %12 = vsyncpa [#allocation5], 0  ;;  %s357_s15 = smov [#allocation3]  }
   0x3   :  { %s18_s16 = sshll.u32 %s357_s15, 4  ;;  %s19_s16 = int_to_ptr.vmem [resolvable:$true] %s18_s16 }
   0x4   :  { %s299_s17 = scalar_lea.vmem %s19_s16, 128  ;;  %p304_p1 = scmp.lt.s32.totalorder %s19_s16, %s19_s16 }
   0x5   :  { %p300_p0 = scmp.ne.s32.totalorder %s19_s16, %s299_s17  ;;  %p305_p2 = scmp.lt.s32.totalorder %s299_s17, %s299_s17 }
   0x7   :  { %p306_p3 = por %p305_p2, %p304_p1 }
   0x9   :  { %p307_p4 = pnand %p306_p3, %p300_p0 }
   0xb   :  { %310 = shalt.err (!%p307_p4)
}
   0xc   :  { %s358_s18 = smov 64   ;;  %s359_s19 = smov 4  }
   0xd   :  { %24 = dma.hbm_to_vmem [thread:$0]  %s421_s0, 128, %s19_s16, [#allocation4], %s358_s18, %s358_s18, %s359_s19  }
   0xe   :  { %s360_s22 = smov [#allocation6]  }
   0xf   :  { %s30_s23 = sshll.u32 %s360_s22, 4  ;;  %s31_s23 = int_to_ptr.vmem [resolvable:$true] %s30_s23 }
  0x10   :  { %s319_s24 = scalar_lea.vmem %s31_s23, 2048  ;;  %p324_p6 = scmp.lt.s32.totalorder %s31_s23, %s31_s23 }
  0x11   :  { %p320_p5 = scmp.ne.s32.totalorder %s31_s23, %s319_s24  ;;  %p325_p7 = scmp.lt.s32.totalorder %s319_s24, %s319_s24 }
  0x13   :  { %p326_p8 = por %p325_p7, %p324_p6 }
  0x15   :  { %p327_p9 = pnand %p326_p8, %p320_p5 }
  0x17   :  { %330 = shalt.err (!%p327_p9)
}
  0x18   :  { %s361_s25 = smov 128   ;;  %s362_s26 = smov 8  }
  0x19   :  { %36 = dma.hbm_to_vmem [thread:$0]  %s422_s1, 2048, %s31_s23, [#allocation7], %s361_s25, %s361_s25, %s362_s26  }
  0x1a   :  { %351 = dma.done.wait [#allocation4], 128  }
  0x1b   :  { %352 = vsyncadd [#allocation4], 4294967168 }
  0x1c   :  { %353 = dma.done.wait [#allocation7], 2048  }
  0x1d   :  { %354 = vsyncadd [#allocation7], 4294965248  ;;  %v66_v0 = vld [vmem:[#allocation6 + $0x78] sm:$0xff]  ;;  %v65_v1 = vld [vmem:[#allocation6 + $0x70] sm:$0xff]  ;;  %vm165_vm0 = vcmask 261120   ;;  %s363_s0 = smov 96   ;;  %v175_v35 = vstv %s424_s3 }
  0x1e   :  { %246 = vmatprep.subr.mxu0 %v66_v0  ;;  %v64_v2 = vld [vmem:[#allocation6 + $0x68] sm:$0xff]  ;;  %v63_v3 = vld [vmem:[#allocation6 + $0x60] sm:$0xff]  ;;  %v225_v4 = vld [vmem:[#allocation3] sm:$0xff]   ;;  %vm186_vm1 = vcmask 7168   ;;  %vm199_vm2 = vcmask 277760   ;;  %vm202_vm3 = vcmask 1047824  }
  0x1f   :  { %247 = vmatpush3.msra.mxu0 %v66_v0  ;;  %v62_v5 = vld [vmem:[#allocation6 + $0x58] sm:$0xff]  ;;  %v226_v6 = vunpack.c.l.bf16 %v225_v4  ;;  %v61_v7 = vld [vmem:[#allocation6 + $0x50] sm:$0xff]  ;;  %v60_v8 = vld [vmem:[#allocation6 + $0x48] sm:$0xff]  ;;  %v227_v18 = vunpack.c.h.bf16 %v225_v4  ;;  %s365_s3 = smov [#allocation8]   ;;  %v366_v46 = vmov 0.0  }
  0x20   :  { %248 = vmatprep.subr.mxu0 %v65_v1  ;;  %v59_v9 = vld [vmem:[#allocation6 + $0x40] sm:$0xff]  ;;  %v58_v10 = vld [vmem:[#allocation6 + $0x38] sm:$0xff]  ;;  %v57_v11 = vld [vmem:[#allocation6 + $0x30] sm:$0xff]  ;;  %s210_s6 = sshll.u32 %s365_s3, 4  ;;  %s211_s6 = int_to_ptr.vmem [resolvable:$true] %s210_s6 }
  0x21   :  { %249 = vmatpush3.msra.mxu0 %v65_v1  ;;  %278 = vmatprep.mubr.f32.mxu0 %v226_v6  ;;  %v56_v12 = vld [vmem:[#allocation6 + $0x28] sm:$0xff]  ;;  %v55_v13 = vld [vmem:[#allocation6 + $0x20] sm:$0xff]  ;;  %v54_v14 = vld [vmem:[#allocation6 + $0x18] sm:$0xff]  ;;  %s331_s7 = scalar_lea.vmem %s211_s6, 256  ;;  %p336_p11 = scmp.lt.s32.totalorder %s211_s6, %s211_s6 }
  0x22   :  { %250 = vmatprep.subr.mxu0 %v64_v2  ;;  %v53_v15 = vld [vmem:[#allocation6 + $0x10] sm:$0xff]  ;;  %v52_v16 = vld [vmem:[#allocation6 + $0x8] sm:$0xff]  ;;  %v51_v17 = vld [vmem:[#allocation6] sm:$0xff]  ;;  %p332_p10 = scmp.ne.s32.totalorder %s211_s6, %s331_s7  ;;  %p337_p12 = scmp.lt.s32.totalorder %s331_s7, %s331_s7 }
  0x23   :  { %251 = vmatpush3.msra.mxu0 %v64_v2  ;;  %v223_v24 = vld [vmem:[%s423_s2] ss:$0 sm:$0xff]  ;;  %s364_s2 = smov 32  }
  0x24   :  { %252 = vmatprep.subr.mxu0 %v63_v3  ;;  %p338_p13 = por %p337_p12, %p336_p11 }
  0x25   :  { %253 = vmatpush3.msra.mxu0 %v63_v3 }
  0x26   :  { %254 = vmatprep.subr.mxu0 %v62_v5  ;;  %p339_p0 = pnand %p338_p13, %p332_p10 }
  0x27   :  { %255 = vmatpush3.msra.mxu0 %v62_v5 }
  0x28   :  { %256 = vmatprep.subr.mxu0 %v61_v7 }
  0x29   :  { %257 = vmatpush3.msra.mxu0 %v61_v7 }
  0x2a   :  { %258 = vmatprep.subr.mxu0 %v60_v8 }
  0x2b   :  { %259 = vmatpush3.msra.mxu0 %v60_v8 }
  0x2c   :  { %260 = vmatprep.subr.mxu0 %v59_v9 }
  0x2d   :  { %261 = vmatpush3.msra.mxu0 %v59_v9 }
  0x2e   :  { %262 = vmatprep.subr.mxu0 %v58_v10 }
  0x2f   :  { %263 = vmatpush3.msra.mxu0 %v58_v10 }
  0x30   :  { %264 = vmatprep.subr.mxu0 %v57_v11 }
  0x31   :  { %265 = vmatpush3.msra.mxu0 %v57_v11 }
  0x32   :  { %266 = vmatprep.subr.mxu0 %v56_v12 }
  0x33   :  { %267 = vmatpush3.msra.mxu0 %v56_v12 }
  0x34   :  { %268 = vmatprep.subr.mxu0 %v55_v13 }
  0x35   :  { %269 = vmatpush3.msra.mxu0 %v55_v13 }
  0x36   :  { %270 = vmatprep.subr.mxu0 %v54_v14 }
  0x37   :  { %271 = vmatpush3.msra.mxu0 %v54_v14 }
  0x38   :  { %272 = vmatprep.subr.mxu0 %v53_v15 }
  0x39   :  { %273 = vmatpush3.msra.mxu0 %v53_v15 }
  0x3a   :  { %274 = vmatprep.subr.mxu0 %v52_v16 }
  0x3b   :  { %275 = vmatpush3.msra.mxu0 %v52_v16 }
  0x3c   :  { %276 = vmatprep.subr.mxu0 %v51_v17 }
  0x3d   :  { %277 = vmatpush3.msra.mxu0 %v51_v17 }
  0x3e   :  { %279 = vmatmul.mubr.f32.vlgmr.msra.gmra.mxu0 %v227_v18 }
  0xfe   :  { %v280_v19 = vpop.f32.mrf.mxu0 }
  0xff   :  { %190 = vst.msk [vmem:[#allocation8 + $0x8] sm:$0xff] %vm165_vm0, %v280_v19  ;;  %v143_v26 = vmul.f32 %v280_v19, %v280_v19 }
 0x100   :  { %v133_v20 = vpop.f32.mrf.mxu0 }
 0x101   :  { %189 = vst.msk [vmem:[#allocation8] sm:$0xff] %vm165_vm0, %v133_v20  ;;  %146 = vrot.lane.b32.xlu0 %v133_v20, %s363_s0  ;;  %v142_v21 = vmul.f32 %v133_v20, %v133_v20 }
 0x105   :  { %148 = vrot.lane.b32.xlu0 %v280_v19, %s363_s0 }
 0x173   :  { %v147_v22 = vpop.permute.xlu0 %146 }
 0x174   :  { %v152_v23 = vsub.f32 %v142_v21, %v147_v22 }
 0x176   :  { %v154_v25 = vmul.f32 0.5, %v152_v23 }
 0x177   :  { %v149_v27 = vpop.permute.xlu0 %148 }
 0x178   :  { %v153_v28 = vsub.f32 %v143_v26, %v149_v27  ;;  %v163_v29 = vmul.f32 %v223_v24, %v154_v25 }
 0x17a   :  { %v155_v30 = vmul.f32 0.5, %v153_v28  ;;  %v166_v31 = vsel %vm165_vm0, %v163_v29, 0.0 }
 0x17b   :  { %167 = vadd.xlane.f32.xlu1 %v166_v31 }
 0x17c   :  { %v164_v32 = vmul.f32 %v223_v24, %v155_v30 }
 0x17e   :  { %v169_v33 = vsel %vm165_vm0, %v164_v32, 0.0 }
 0x17f   :  { %170 = vadd.xlane.f32.xlu1 %v169_v33 }
 0x204   :  { %v168_v34 = vpop.xlane.xlu1 %167 }
 0x205   :  { %v172_v36 = vadd.f32 %v168_v34, %v133_v20 }
 0x207   :  { %v176_v37 = vadd.f32 %v175_v35, %v172_v36 }
 0x208   :  { %v171_v38 = vpop.xlane.xlu1 %170 }
 0x209   :  { %v173_v39 = vadd.f32 %v280_v19, %v171_v38  ;;  %180 = vrot.lane.b32.xlu0 %v176_v37, %s358_s18 }
 0x20b   :  { %v177_v40 = vadd.f32 %v175_v35, %v173_v39 }
 0x20d   :  { %182 = vrot.lane.b32.xlu1 %v177_v40, %s358_s18 }
 0x27b   :  { %v181_v41 = vpop.permute.xlu0 %180 }
 0x27c   :  { %v187_v42 = vsel %vm186_vm1, %v181_v41, 1.0 }
 0x27d   :  { %193 = vrot.lane.b32.xlu0 %v187_v42, %s364_s2 }
 0x27f   :  { %v183_v43 = vpop.permute.xlu1 %182 }
 0x280   :  { %v188_v44 = vsel %vm186_vm1, %v183_v43, 1.0 }
 0x281   :  { %195 = vrot.lane.b32.xlu0 %v188_v44, %s364_s2 }
 0x2ef   :  { %v194_v45 = vpop.permute.xlu0 %193 }
 0x2f0   :  { %200 = vst.msk [vmem:[#allocation8] sm:$0xff] %vm199_vm2, %v194_v45 }
 0x2f1   :  { %203 = vst.msk [vmem:[#allocation8] sm:$0xff] %vm202_vm3, %v366_v46 }
 0x2f3   :  { %v196_v47 = vpop.permute.xlu0 %195 }
 0x2f4   :  { %201 = vst.msk [vmem:[#allocation8 + $0x8] sm:$0xff] %vm199_vm2, %v196_v47 }
 0x2f5   :  { %204 = vst.msk [vmem:[#allocation8 + $0x8] sm:$0xff] %vm202_vm3, %v366_v46 }
 0x2f6   :  { %342 = shalt.err (!%p339_p0)
}
 0x2f7   :  { %216 = dma.vmem_to_hbm [thread:$0]  %s211_s6, 256, %s425_s4, [#allocation5], %s361_s25, %s361_s25, %s362_s26  }
 0x2f8   :  { %355 = dma.done.wait [#allocation5], 256  }
 0x2f9   :  { %356 = vsyncadd [#allocation5], 4294967040 }
 0x2fa   :  { %220 = vsyncpa [#allocation4], 1 }
 0x2fb   :  { %221 = vsyncpa [#allocation7], 1 }
 0x2fc   :  { %222 = vsyncpa [#allocation5], 1 }

</bundles_post_ra>
